<compile_context>
chip_gen: v7x
topology: tpu7x:2x2x1
jax: 0.10.0
libtpu: 0.0.40
codegen_flags: <defaults>
</compile_context>

<pallas_src>
import functools

import jax
import jax.numpy as jnp
from jax.experimental import pallas as pl
from jax.experimental.pallas import tpu as pltpu

LANE = 128
SUBLANE = 8


def _mse_partial_kernel(x_ref, y_ref, o_ref, *, rows):
    """Accumulate sum((x - y)^2) over this core's row range into an (8,128) slab."""
    c = pl.program_id(0)          # core (parallel) axis
    i = pl.program_id(1)          # reduction (arbitrary) axis
    steps = pl.num_programs(1)
    tm = x_ref.shape[0]

    @pl.when(i == 0)
    def _():
        o_ref[...] = jnp.zeros_like(o_ref)

    logical_tile = c * steps + i
    # Masking is only needed for the partial last tile and for logically
    # out-of-range (clamped) tiles; both satisfy logical_tile*tm + tm > rows.
    needs_mask = logical_tile * tm + tm > rows

    @pl.when(jnp.logical_not(needs_mask))
    def _():
        # Fast path: fully in-bounds tile, no iota/compare/select work.
        d = x_ref[...].astype(jnp.float32) - y_ref[...].astype(jnp.float32)
        sq = d * d
        # (tm,128) -> (tm//8, 8, 128) groups whole vregs; reducing the grouped
        # axis is pure VALU vreg adds (no per-step XLU cross-lane reduction).
        o_ref[...] += sq.reshape(1, tm // SUBLANE, SUBLANE, LANE).sum(axis=1)

    @pl.when(needs_mask)
    def _():
        d = x_ref[...].astype(jnp.float32) - y_ref[...].astype(jnp.float32)
        sq = d * d
        # int32 row index overflows only past ~2^31 rows (~2.7e11 elements).
        row_idx = logical_tile * tm + jax.lax.broadcasted_iota(jnp.int32, sq.shape, 0)
        # Must be a select (not a mask multiply): the padded / clamped region
        # may hold garbage or NaN from uninitialized VMEM.
        sq = jnp.where(row_idx < rows, sq, 0.0)
        o_ref[...] += sq.reshape(1, tm // SUBLANE, SUBLANE, LANE).sum(axis=1)


def l2_temporal_loss(pred, target, *, tm=None, num_cores=1):
    """MSE(pred, target) with mean reduction, matching torch.nn.MSELoss()."""
    assert pred.shape == target.shape, "output/target shape mismatch"
    n = pred.size
    if n == 0:
        # torch.nn.MSELoss over zero elements is NaN (mean of empty).
        return jnp.float32(jnp.nan)

    xf = jnp.ravel(pred)
    yf = jnp.ravel(target)

    # Sublane alignment from the *max* packing of both dtypes:
    # 8 rows for 32-bit, 16 for bf16/f16, 32 for int8/fp8.
    item_x = jnp.dtype(pred.dtype).itemsize
    item_y = jnp.dtype(target.dtype).itemsize
    packing = max(1, 4 // item_x, 4 // item_y)
    row_align = SUBLANE * packing

    # Kernel runs over the aligned prefix only; the ragged tail (at most
    # LANE*row_align - 1 elements) is summed in plain JAX -- no jnp.pad copy.
    n_aligned = n - (n % (LANE * row_align))
    if n_aligned < n:
        dt = xf[n_aligned:].astype(jnp.float32) - yf[n_aligned:].astype(jnp.float32)
        tail_sum = jnp.sum(dt * dt)
    else:
        tail_sum = jnp.float32(0.0)

    if n_aligned == 0:
        return tail_sum / n

    rows = n_aligned // LANE
    x2 = xf[:n_aligned].reshape(rows, LANE)
    y2 = yf[:n_aligned].reshape(rows, LANE)

    # Dtype-aware default row tile: 2 MiB blocks -> 8 MiB of double-buffered
    # inputs, safe on every generation with the 32 MiB scoped-VMEM limit below.
    if tm is None:
        tm = 4096 * packing
    tm = min(tm, rows)
    tm = max(row_align, (tm // row_align) * row_align)

    total_tiles = pl.cdiv(rows, tm)
    nc = max(1, min(num_cores, total_tiles))
    steps = pl.cdiv(total_tiles, nc)
    last_tile = total_tiles - 1

    def in_map(c, i):
        # Clamp logically out-of-range tiles (odd tile counts with nc > 1) to
        # the last valid tile; the in-kernel row mask zeroes their contribution.
        return (jnp.minimum(c * steps + i, last_tile), 0)

    bytes_accessed = n_aligned * (item_x + item_y) + 4 * nc * SUBLANE * LANE

    partials = pl.pallas_call(
        functools.partial(_mse_partial_kernel, rows=rows),
        out_shape=jax.ShapeDtypeStruct((nc, SUBLANE, LANE), jnp.float32),
        grid_spec=pltpu.PrefetchScalarGridSpec(
            num_scalar_prefetch=0,
            grid=(nc, steps),
            in_specs=[
                pl.BlockSpec((tm, LANE), in_map),
                pl.BlockSpec((tm, LANE), in_map),
            ],
            out_specs=pl.BlockSpec((1, SUBLANE, LANE), lambda c, i: (c, 0, 0)),
        ),
        compiler_params=pltpu.CompilerParams(
            dimension_semantics=("parallel", "arbitrary"),
            vmem_limit_bytes=32 * 1024 * 1024,
        ),
        cost_estimate=pl.CostEstimate(
            flops=3 * n_aligned,
            transcendentals=0,
            bytes_accessed=int(bytes_accessed),
        ),
    )(x2, y2)

    # One tiny cross-lane reduction + mean normalization in plain JAX.
    return (jnp.sum(partials) + tail_sum) / n


class L2TemporalLoss:
    """JAX/Pallas equivalent of the PyTorch L2 temporal (MSE) LossModule."""

    def __init__(self, key_output: str, key_target: str):
        self.name = "l2_loss"
        self.key_output = key_output
        self.key_target = key_target

    def __call__(self, info):
        return l2_temporal_loss(info[self.key_output], info[self.key_target])


if __name__ == "__main__":
    key = jax.random.PRNGKey(0)
    k1, k2, k3, k4, k5, k6 = jax.random.split(key, 6)

    # A: small NCHW-like temporal feature maps (B=2, C=4, 16x16), single tile,
    #    unmasked fast path.
    out_a = jax.random.normal(k1, (2, 4, 16, 16), dtype=jnp.float32)
    tgt_a = jax.random.normal(k2, (2, 4, 16, 16), dtype=jnp.float32)
    loss_mod = L2TemporalLoss(key_output="pred", key_target="gt")
    loss_a = jax.block_until_ready(loss_mod({"pred": out_a, "gt": tgt_a}))
    ref_a = jnp.mean((out_a - tgt_a) ** 2)
    assert jnp.allclose(loss_a, ref_a, rtol=1e-5, atol=1e-6), (loss_a, ref_a)

    # B: multi-tile path with a partial (masked) last tile; run both with the
    #    default single-partial layout and with nc=2 (exercises the clamped,
    #    fully-masked duplicate tile).
    out_b = jax.random.normal(k3, (2, 4, 64, 130), dtype=jnp.float32)
    tgt_b = jax.random.normal(k4, (2, 4, 64, 130), dtype=jnp.float32)
    ref_b = jnp.mean((out_b - tgt_b) ** 2)
    loss_b1 = jax.block_until_ready(l2_temporal_loss(out_b, tgt_b, tm=64))
    assert jnp.allclose(loss_b1, ref_b, rtol=1e-5, atol=1e-6), (loss_b1, ref_b)
    loss_b2 = jax.block_until_ready(l2_temporal_loss(out_b, tgt_b, tm=64, num_cores=2))
    assert jnp.allclose(loss_b2, ref_b, rtol=1e-5, atol=1e-6), (loss_b2, ref_b)

    # C: ragged bf16 input large enough to use the kernel on the aligned
    #    prefix plus a plain-JAX tail sum (no jnp.pad copy).
    out_c = jax.random.normal(k5, (3, 33, 130), dtype=jnp.bfloat16)
    tgt_c = jax.random.normal(k6, (3, 33, 130), dtype=jnp.bfloat16)
    loss_c = jax.block_until_ready(l2_temporal_loss(out_c, tgt_c))
    ref_c = jnp.mean((out_c.astype(jnp.float32) - tgt_c.astype(jnp.float32)) ** 2)
    assert jnp.allclose(loss_c, ref_c, rtol=1e-4, atol=1e-5), (loss_c, ref_c)

    # D: tiny ragged bf16 input, entirely handled by the plain-JAX tail path.
    out_d = out_c[:, :1, :7].reshape(3, 1, 7)
    tgt_d = tgt_c[:, :1, :7].reshape(3, 1, 7)
    loss_d = jax.block_until_ready(l2_temporal_loss(out_d, tgt_d))
    ref_d = jnp.mean((out_d.astype(jnp.float32) - tgt_d.astype(jnp.float32)) ** 2)
    assert jnp.allclose(loss_d, ref_d, rtol=1e-4, atol=1e-5), (loss_d, ref_d)

    print("KERNEL_OK")
</pallas_src>

<mosaic_0001>
module attributes {stable_mosaic.version = 11 : i64} {
  func.func @_mse_partial_kernel(%arg0: i32, %arg1: i32, %arg2: memref<16x128xf32, #tpu.memory_space<vmem>>, %arg3: memref<16x128xf32, #tpu.memory_space<vmem>>, %arg4: memref<1x8x128xf32, #tpu.memory_space<vmem>>) attributes {dimension_semantics = [#tpu.dimension_semantics<parallel>, #tpu.dimension_semantics<arbitrary>], iteration_bounds = array<i64: 1, 1>, scalar_prefetch = 0 : i64, scratch_operands = 0 : i64, tpu.core_type = #tpu.core_type<tc>, window_params = [{transform_indices = @transform_0, window_bounds = array<i64: 16, 128>}, {transform_indices = @transform_1, window_bounds = array<i64: 16, 128>}, {transform_indices = @transform_2, window_bounds = array<i64: 1, 8, 128>}]} {
    %c0_i32 = arith.constant 0 : i32
    %0 = arith.cmpi eq, %arg1, %c0_i32 : i32
    %1 = arith.extui %0 : i1 to i32
    %c0_i32_0 = arith.constant 0 : i32
    %2 = arith.cmpi ne, %1, %c0_i32_0 : i32
    scf.if %2 {
      %cst = arith.constant 0.000000e+00 : f32
      %13 = vector.broadcast %cst : f32 to vector<1x8x128xf32>
      %c0 = arith.constant 0 : index
      %c0_5 = arith.constant 0 : index
      %c0_6 = arith.constant 0 : index
      %14 = vector.load %arg4[%c0, %c0_5, %c0_6] : memref<1x8x128xf32, #tpu.memory_space<vmem>>, vector<1x8x128xf32>
      tpu.vector_store %arg4[%c0, %c0_5, %c0_6], %13 {strides = array<i32>} : memref<1x8x128xf32, #tpu.memory_space<vmem>>, vector<1x8x128xf32>,
    } else {
    }
    %c1_i32 = arith.constant 1 : i32
    %3 = arith.muli %arg0, %c1_i32 : i32
    %4 = arith.addi %3, %arg1 : i32
    %c16_i32 = arith.constant 16 : i32
    %5 = arith.muli %4, %c16_i32 : i32
    %c16_i32_1 = arith.constant 16 : i32
    %6 = arith.addi %5, %c16_i32_1 : i32
    %c16_i32_2 = arith.constant 16 : i32
    %7 = arith.cmpi sgt, %6, %c16_i32_2 : i32
    %true = arith.constant true
    %8 = arith.xori %7, %true : i1
    %9 = arith.extui %8 : i1 to i32
    %c0_i32_3 = arith.constant 0 : i32
    %10 = arith.cmpi ne, %9, %c0_i32_3 : i32
    scf.if %10 {
      %c0 = arith.constant 0 : index
      %c0_5 = arith.constant 0 : index
      %13 = vector.load %arg2[%c0, %c0_5] : memref<16x128xf32, #tpu.memory_space<vmem>>, vector<16x128xf32>
      %c0_6 = arith.constant 0 : index
      %c0_7 = arith.constant 0 : index
      %14 = vector.load %arg3[%c0_6, %c0_7] : memref<16x128xf32, #tpu.memory_space<vmem>>, vector<16x128xf32>
      %15 = arith.subf %13, %14 : vector<16x128xf32>
      %16 = arith.mulf %15, %15 : vector<16x128xf32>
      %c0_8 = arith.constant 0 : index
      %c0_9 = arith.constant 0 : index
      %c0_10 = arith.constant 0 : index
      %17 = vector.load %arg4[%c0_8, %c0_9, %c0_10] : memref<1x8x128xf32, #tpu.memory_space<vmem>>, vector<1x8x128xf32>
      %18 = vector.shape_cast %16 : vector<16x128xf32> to vector<1x2x8x128xf32>
      %cst = arith.constant dense<0.000000e+00> : vector<1x8x128xf32>
      %19 = vector.multi_reduction <add>, %18, %cst [1] : vector<1x2x8x128xf32> to vector<1x8x128xf32>
      %20 = arith.addf %17, %19 : vector<1x8x128xf32>
      %c0_11 = arith.constant 0 : index
      %c0_12 = arith.constant 0 : index
      %c0_13 = arith.constant 0 : index
      %21 = vector.load %arg4[%c0_11, %c0_12, %c0_13] : memref<1x8x128xf32, #tpu.memory_space<vmem>>, vector<1x8x128xf32>
      tpu.vector_store %arg4[%c0_11, %c0_12, %c0_13], %20 {strides = array<i32>} : memref<1x8x128xf32, #tpu.memory_space<vmem>>, vector<1x8x128xf32>,
    } else {
    }
    %11 = arith.extui %7 : i1 to i32
    %c0_i32_4 = arith.constant 0 : i32
    %12 = arith.cmpi ne, %11, %c0_i32_4 : i32
    scf.if %12 {
      %c0 = arith.constant 0 : index
      %c0_5 = arith.constant 0 : index
      %13 = vector.load %arg2[%c0, %c0_5] : memref<16x128xf32, #tpu.memory_space<vmem>>, vector<16x128xf32>
      %c0_6 = arith.constant 0 : index
      %c0_7 = arith.constant 0 : index
      %14 = vector.load %arg3[%c0_6, %c0_7] : memref<16x128xf32, #tpu.memory_space<vmem>>, vector<16x128xf32>
      %15 = arith.subf %13, %14 : vector<16x128xf32>
      %16 = arith.mulf %15, %15 : vector<16x128xf32>
      %c16_i32_8 = arith.constant 16 : i32
      %17 = arith.muli %4, %c16_i32_8 : i32
      %18 = tpu.iota {dimensions = array<i32: 0>} : vector<16x128xi32>
      %19 = vector.broadcast %17 : i32 to vector<16x128xi32>
      %20 = arith.addi %19, %18 : vector<16x128xi32>
      %c16_i32_9 = arith.constant 16 : i32
      %21 = vector.broadcast %c16_i32_9 : i32 to vector<16x128xi32>
      %22 = arith.cmpi slt, %20, %21 : vector<16x128xi32>
      %cst = arith.constant 0.000000e+00 : f32
      %23 = vector.broadcast %cst : f32 to vector<16x128xf32>
      %24 = arith.select %22, %16, %23 : vector<16x128xi1>, vector<16x128xf32>
      %c0_10 = arith.constant 0 : index
      %c0_11 = arith.constant 0 : index
      %c0_12 = arith.constant 0 : index
      %25 = vector.load %arg4[%c0_10, %c0_11, %c0_12] : memref<1x8x128xf32, #tpu.memory_space<vmem>>, vector<1x8x128xf32>
      %26 = vector.shape_cast %24 : vector<16x128xf32> to vector<1x2x8x128xf32>
      %cst_13 = arith.constant dense<0.000000e+00> : vector<1x8x128xf32>
      %27 = vector.multi_reduction <add>, %26, %cst_13 [1] : vector<1x2x8x128xf32> to vector<1x8x128xf32>
      %28 = arith.addf %25, %27 : vector<1x8x128xf32>
      %c0_14 = arith.constant 0 : index
      %c0_15 = arith.constant 0 : index
      %c0_16 = arith.constant 0 : index
      %29 = vector.load %arg4[%c0_14, %c0_15, %c0_16] : memref<1x8x128xf32, #tpu.memory_space<vmem>>, vector<1x8x128xf32>
      tpu.vector_store %arg4[%c0_14, %c0_15, %c0_16], %28 {strides = array<i32>} : memref<1x8x128xf32, #tpu.memory_space<vmem>>, vector<1x8x128xf32>,
    } else {
    }
    return
  }
  func.func @transform_0(%arg0: i32, %arg1: i32) -> (i32, i32) {
    %c1_i32 = arith.constant 1 : i32
    %0 = arith.muli %arg0, %c1_i32 : i32
    %1 = arith.addi %0, %arg1 : i32
    %c0_i32 = arith.constant 0 : i32
    %2 = arith.minsi %1, %c0_i32 : i32
    %c0_i32_0 = arith.constant 0 : i32
    %c0_i32_1 = arith.constant 0 : i32
    return %2, %c0_i32_0 : i32, i32
  }
  func.func @transform_1(%arg0: i32, %arg1: i32) -> (i32, i32) {
    %c1_i32 = arith.constant 1 : i32
    %0 = arith.muli %arg0, %c1_i32 : i32
    %1 = arith.addi %0, %arg1 : i32
    %c0_i32 = arith.constant 0 : i32
    %2 = arith.minsi %1, %c0_i32 : i32
    %c0_i32_0 = arith.constant 0 : i32
    %c0_i32_1 = arith.constant 0 : i32
    return %2, %c0_i32_0 : i32, i32
  }
  func.func @transform_2(%arg0: i32, %arg1: i32) -> (i32, i32, i32) {
    %c0_i32 = arith.constant 0 : i32
    %c0_i32_0 = arith.constant 0 : i32
    %c0_i32_1 = arith.constant 0 : i32
    return %arg0, %c0_i32, %c0_i32_0 : i32, i32, i32
  }
}

</mosaic_0001>

<bundles_post_ra>
// kernel: tpu_custom_call.1
= control target key start
LH: loop header
LB: loop body
LE: loop exit
PB: predicated region body
PF: predicated region fallthrough
CT: control target
= control target key end

     0   :  { %7 = vsyncpa [#allocation3], 0  ;;  %s264_s0 = inlined_call_operand.hbm [shape: f32[16,128], index: 0, kind: input, shape index: {}]   ;;  %s265_s1 = inlined_call_operand.hbm [shape: f32[16,128], index: 1, kind: input, shape index: {}]   ;;  %s266_s2 = inlined_call_operand.hbm [shape: f32[1,8,128], index: 2, kind: output, shape index: {}]  }
   0x1   :  { %8 = vsyncpa [#allocation6], 0 }
   0x2   :  { %9 = vsyncpa [#allocation4], 0  ;;  %s208_s9 = smov [#allocation2]   ;;  %s136_s13 = scalar_lea.hbm %s264_s0, 256 }
   0x3   :  { %s21_s10 = sshll.u32 %s208_s9, 4  ;;  %p137_p0 = scmp.ne.s32.totalorder %s264_s0, %s136_s13  ;;  %s22_s10 = int_to_ptr.vmem [resolvable:$true] %s21_s10 }
   0x4   :  { %p140_p1 = scmp.lt.u32.totalorder %s136_s13, %s264_s0 }
   0x6   :  { %p142_p2 = pnand %p140_p1, %p137_p0 }
   0x8   :  { %145 = shalt.err (!%p142_p2)
}
   0x9   :  { %s146_s18 = scalar_lea.vmem %s22_s10, 256  ;;  %p151_p4 = scmp.lt.s32.totalorder %s22_s10, %s22_s10 }
   0xa   :  { %p147_p3 = scmp.ne.s32.totalorder %s22_s10, %s146_s18  ;;  %p152_p5 = scmp.lt.s32.totalorder %s146_s18, %s146_s18 }
   0xc   :  { %p153_p6 = por %p152_p5, %p151_p4 }
   0xe   :  { %p154_p7 = pnand %p153_p6, %p147_p3 }
  0x10   :  { %157 = shalt.err (!%p154_p7)
}
  0x11   :  { %s209_s19 = smov 128   ;;  %s210_s20 = smov 8  }
  0x12   :  { %27 = dma.hbm_to_vmem [thread:$0]  %s264_s0, 256, %s22_s10, [#allocation3], %s209_s19, %s209_s19, %s210_s20  }
  0x13   :  { %s211_s23 = smov [#allocation5]   ;;  %s158_s27 = scalar_lea.hbm %s265_s1, 256 }
  0x14   :  { %s39_s24 = sshll.u32 %s211_s23, 4  ;;  %p159_p8 = scmp.ne.s32.totalorder %s265_s1, %s158_s27  ;;  %s40_s24 = int_to_ptr.vmem [resolvable:$true] %s39_s24 }
  0x15   :  { %p162_p9 = scmp.lt.u32.totalorder %s158_s27, %s265_s1 }
  0x17   :  { %p164_p10 = pnand %p162_p9, %p159_p8 }
  0x19   :  { %167 = shalt.err (!%p164_p10)
}
  0x1a   :  { %s168_s4 = scalar_lea.vmem %s40_s24, 256  ;;  %p173_p12 = scmp.lt.s32.totalorder %s40_s24, %s40_s24 }
  0x1b   :  { %p169_p11 = scmp.ne.s32.totalorder %s40_s24, %s168_s4  ;;  %p174_p13 = scmp.lt.s32.totalorder %s168_s4, %s168_s4 }
  0x1d   :  { %p175_p0 = por %p174_p13, %p173_p12 }
  0x1f   :  { %p176_p1 = pnand %p175_p0, %p169_p11 }
  0x21   :  { %179 = shalt.err (!%p176_p1)
}
  0x22   :  { %45 = dma.hbm_to_vmem [thread:$0]  %s265_s1, 256, %s40_s24, [#allocation6], %s209_s19, %s209_s19, %s210_s20  }
  0x23   :  { %202 = dma.done.wait [#allocation3], 256  }
  0x24   :  { %203 = vsyncadd [#allocation3], 4294967040 }
  0x25   :  { %204 = dma.done.wait [#allocation6], 256  }
  0x26   :  { %205 = vsyncadd [#allocation6], 4294967040  ;;  %v73_v0 = vld [vmem:[#allocation2] sm:$0xff]  ;;  %v74_v1 = vld [vmem:[#allocation2 + $0x8] sm:$0xff]  ;;  %s212_s6 = smov [#allocation7]  }
  0x27   :  { %v75_v2 = vld [vmem:[#allocation5] sm:$0xff]  ;;  %v76_v3 = vld [vmem:[#allocation5 + $0x8] sm:$0xff]  ;;  %s116_s7 = sshll.u32 %s212_s6, 4  ;;  %s117_s7 = int_to_ptr.vmem [resolvable:$true] %s116_s7 }
  0x28   :  { %v77_v4 = vsub.f32 %v73_v0, %v75_v2  ;;  %v78_v5 = vsub.f32 %v74_v1, %v76_v3  ;;  %s180_s8 = scalar_lea.vmem %s117_s7, 128  ;;  %p185_p3 = scmp.lt.s32.totalorder %s117_s7, %s117_s7 }
  0x29   :  { %p181_p2 = scmp.ne.s32.totalorder %s117_s7, %s180_s8  ;;  %p186_p4 = scmp.lt.s32.totalorder %s180_s8, %s180_s8 }
  0x2a   :  { %v79_v6 = vmul.f32 %v77_v4, %v77_v4  ;;  %v80_v7 = vmul.f32 %v78_v5, %v78_v5 }
  0x2b   :  { %p187_p5 = por %p186_p4, %p185_p3 }
  0x2c   :  { %v82_v8 = vadd.f32 %v80_v7, %v79_v6 }
  0x2d   :  { %p188_p6 = pnand %p187_p5, %p181_p2 }
  0x2e   :  { %84 = vst [vmem:[#allocation7] sm:$0xff] %v82_v8 }
  0x2f   :  { %191 = shalt.err (!%p188_p6)
}
  0x30   :  { %s192_s10 = scalar_lea.hbm %s266_s2, 128 }
  0x31   :  { %p193_p7 = scmp.ne.s32.totalorder %s266_s2, %s192_s10  ;;  %p196_p8 = scmp.lt.u32.totalorder %s192_s10, %s266_s2 }
  0x33   :  { %p198_p9 = pnand %p196_p8, %p193_p7 }
  0x35   :  { %201 = shalt.err (!%p198_p9)
}
  0x36   :  { %119 = dma.vmem_to_hbm [thread:$0]  %s117_s7, 128, %s266_s2, [#allocation4]  }
  0x37   :  { %206 = dma.done.wait [#allocation4], 128  }
  0x38   :  { %207 = vsyncadd [#allocation4], 4294967168 }
  0x39   :  { %123 = vsyncpa [#allocation3], 1 }
  0x3a   :  { %124 = vsyncpa [#allocation6], 1 }
  0x3b   :  { %125 = vsyncpa [#allocation4], 1 }

</bundles_post_ra>
